<compile_context>
chip_gen: v5e
topology: v5e:2x2
jax: 0.10.0
libtpu: 0.0.40
codegen_flags: <defaults>
</compile_context>

<pallas_src>
import jax
import jax.numpy as jnp
from jax.experimental import pallas as pl
from jax.experimental.pallas import tpu as pltpu


def _round_up(n, m):
    return (n + m - 1) // m * m


def _buf_bytes(rows, cols, dtype):
    """VMEM bytes of one (rows, cols) buffer incl. (sublane, 128-lane) padding."""
    it = jnp.dtype(dtype).itemsize
    sub = 8 * (4 // it) if it < 4 else 8          # f32 -> 8 sublanes, bf16 -> 16
    return _round_up(max(rows, 1), sub) * _round_up(max(cols, 1), 128) * it


def square_kernel(x_ref, xi_ref, wlin_ref, wflat_ref, bias_ref, o_ref, acc_ref):
    """One (dout-tile, batch-tile, i-chunk) grid step of  x @ W_lin^T + x W_bil x + b."""
    k = pl.program_id(2)

    @pl.when(k == 0)
    def _init():
        # Linear term + bias: computed once per output tile, accumulated in f32.
        acc_ref[...] = (
            jnp.dot(x_ref[...], wlin_ref[...], preferred_element_type=jnp.float32)
            + bias_ref[...])

    # Quadratic features for this i-chunk: x2[b, i_local*Din + j] = x_i * x_j, reduced
    # by ONE dense MXU matmul against the matching row slab of the flattened W_bil.
    xi = xi_ref[...]                                   # (bb, bi)   i-chunk of x
    xf = x_ref[...]                                    # (bb, Din)  full row (j factor)
    bb, bi = xi.shape
    d_in = xf.shape[1]
    x2 = (xi[:, :, None] * xf[:, None, :]).reshape(bb, bi * d_in)
    # TODO(synk): audit this merge-reshape with pl.lower_as_mlir at the production Din;
    # if a relayout shows up, switch to the t = x @ W_r (Din, Din*Dout) formulation so
    # the Din^2 replication work moves onto the MXU.
    acc_ref[...] += jnp.dot(x2, wflat_ref[...], preferred_element_type=jnp.float32)

    @pl.when(k == pl.num_programs(2) - 1)
    def _finalize():
        o_ref[...] = acc_ref[...].astype(o_ref.dtype)


def square_layer(x, w_lin, w_bil, b_bil, *, block_b=None, block_dout=None,
                 mxu_dtype=jnp.bfloat16, vmem_budget_bytes=40 * 1024 * 1024):
    """x: (B, Din); w_lin: (Dout, Din); w_bil: (Dout, Din, Din); b_bil: (Dout,).

    mxu_dtype: dtype of the matmul operands.  bf16 is the default on ALL generations
    (the MXU is bf16 everywhere, and the kernel is weight-bandwidth-bound at moderate
    batch); accumulation is always f32.  On v5e (no bf16 VPU) the x2 build incurs
    inserted casts -- pass mxu_dtype=jnp.float32 there if profiling shows it matters.
    """
    B, Din = x.shape
    Dout = w_lin.shape[0]
    out_dtype = x.dtype

    # Batch tile: fill the MXU M dimension (256 rows on v6e/v7x with bf16 operands,
    # 128 otherwise); clamp so a small B stays one full-extent block.
    if block_b is None:
        block_b = 256 if jnp.dtype(mxu_dtype) == jnp.dtype(jnp.bfloat16) else 128
    block_b = min(block_b, B)

    # Dout tile: full Dout when <= 128, else 128-wide lane-dense chunks (unmasked vst).
    if block_dout is None:
        block_dout = Dout if Dout <= 128 else 128
    # TODO(synk): Dout < 128 pads wflat's lane dim up to 8x in VMEM and uses masked
    # output stores; fold several dout chunks (or put batch on the lane axis) rather
    # than zero-padding Dout, which would multiply weight HBM traffic.

    def footprint(bi):
        # Per-step VMEM requirement: 2 pipeline buffers per in/out + scratch + x2 temp.
        return (2 * _buf_bytes(block_b, Din, mxu_dtype)             # x (full rows)
                + 2 * _buf_bytes(block_b, bi, mxu_dtype)            # x (i-chunk)
                + 2 * _buf_bytes(Din, block_dout, mxu_dtype)        # W_lin^T tile
                + 2 * _buf_bytes(bi * Din, block_dout, mxu_dtype)   # flat W_bil slab
                + 2 * _buf_bytes(1, block_dout, jnp.float32)        # bias
                + 2 * _buf_bytes(block_b, block_dout, out_dtype)    # output tile
                + _buf_bytes(block_b, block_dout, jnp.float32)      # f32 accumulator
                + 2 * _buf_bytes(block_b, bi * Din, mxu_dtype))     # x2 temp (+slack)

    # K-streaming chunk along the bilinear i index.  The chunk must be a multiple of
    # 128 (lane rule for the x i-chunk BlockSpec) or Din itself; pick the largest that
    # keeps the working set under the (v7x-safe) budget.
    cands = [Din] + sorted((m for m in range(128, Din, 128) if Din % m == 0),
                           reverse=True)
    block_i = next((bi for bi in cands if footprint(bi) <= vmem_budget_bytes),
                   cands[-1])
    num_k = Din // block_i

    # VMEM limit: actual requirement + headroom, capped at 48 MiB (v7x has only 64 MiB
    # physical per TensorCore; v5e/v6e have 128 MiB so the cap is only relaxed if even
    # the smallest i-chunk exceeds it).
    need = footprint(block_i)
    vmem_limit = min(max(32 << 20, need + max(need // 4, 2 << 20)), 48 << 20)
    if need + (2 << 20) > vmem_limit:
        vmem_limit = need + max(need // 8, 2 << 20)

    # Parameter plumbing (plain JAX glue, outside the hot path).
    wlin_t = w_lin.T.astype(mxu_dtype)                                   # (Din, Dout)
    # wflat[i*Din + j, o] = W_bil[o, i, j]  ->  bilinear term == X2 @ wflat.
    wflat = jnp.transpose(w_bil, (1, 2, 0)).reshape(Din * Din, Dout).astype(mxu_dtype)
    bias = b_bil.reshape(1, Dout).astype(jnp.float32)
    x_in = x.astype(mxu_dtype)

    # Grid (dout, batch, k): k ("arbitrary") innermost so the f32 scratch accumulator is
    # valid; when num_k == 1 the weight slab's block index is constant across the inner
    # batch axis, so it is DMA'd once per dout tile and reused across all batch tiles.
    # TODO(synk): when num_k == 1 and the slab is large, pipeline_mode=pl.Buffered(1) on
    # the wflat spec would halve its VMEM footprint (it is only fetched once per dout tile).
    grid = (pl.cdiv(Dout, block_dout), pl.cdiv(B, block_b), num_k)

    w_item = jnp.dtype(mxu_dtype).itemsize
    flops = 2 * B * Din * Din * Dout + 2 * B * Din * Dout
    bytes_accessed = ((Din * Din * Dout + Din * Dout) * w_item        # weights
                      + B * Din * w_item                              # x
                      + B * Dout * jnp.dtype(out_dtype).itemsize      # out
                      + Dout * 4)                                     # bias
    cost = pl.CostEstimate(flops=flops, transcendentals=0,
                           bytes_accessed=int(bytes_accessed))

    return pl.pallas_call(
        square_kernel,
        out_shape=jax.ShapeDtypeStruct((B, Dout), out_dtype),
        grid_spec=pltpu.PrefetchScalarGridSpec(
            num_scalar_prefetch=0,
            grid=grid,
            in_specs=[
                pl.BlockSpec((block_b, Din), lambda do, bi, k: (bi, 0)),        # x rows
                pl.BlockSpec((block_b, block_i), lambda do, bi, k: (bi, k)),    # x i-chunk
                pl.BlockSpec((Din, block_dout), lambda do, bi, k: (0, do)),     # W_lin^T
                pl.BlockSpec((block_i * Din, block_dout),
                             lambda do, bi, k: (k, do)),                        # W_bil slab
                pl.BlockSpec((1, block_dout), lambda do, bi, k: (0, do)),       # bias
            ],
            out_specs=pl.BlockSpec((block_b, block_dout),
                                   lambda do, bi, k: (bi, do)),
            scratch_shapes=[pltpu.VMEM((block_b, block_dout), jnp.float32)],
        ),
        compiler_params=pltpu.CompilerParams(
            dimension_semantics=("parallel", "parallel", "arbitrary"),
            vmem_limit_bytes=int(vmem_limit),
        ),
        cost_estimate=cost,
    )(x_in, x_in, wlin_t, wflat, bias)


if __name__ == "__main__":
    B, DIN, DOUT = 8, 32, 16

    key = jax.random.PRNGKey(0)
    kx, kl, kb, kc = jax.random.split(key, 4)

    x = jax.random.normal(kx, (B, DIN), dtype=jnp.float32)
    # Deterministic synthetic parameters (shapes match nn.Linear / nn.Bilinear).
    w_lin = jax.random.normal(kl, (DOUT, DIN), dtype=jnp.float32) * (1.0 / jnp.sqrt(DIN))
    w_bil = jax.random.normal(kb, (DOUT, DIN, DIN), dtype=jnp.float32) * (1.0 / DIN)
    b_bil = jax.random.normal(kc, (DOUT,), dtype=jnp.float32) * 0.1

    # Pure-JAX reference.
    ref = (x @ w_lin.T
           + jnp.einsum("bi,oij,bj->bo", x, w_bil, x)
           + b_bil[None, :])

    # f32 MXU-operand path: tight tolerance.
    out_f32 = jax.block_until_ready(
        square_layer(x, w_lin, w_bil, b_bil, mxu_dtype=jnp.float32))
    assert out_f32.shape == (B, DOUT)
    assert jnp.allclose(out_f32, ref, rtol=1e-4, atol=1e-4), "f32 mismatch vs reference"

    # Default bf16-operand path (f32 accumulation): relaxed tolerance.
    out_bf16 = jax.block_until_ready(square_layer(x, w_lin, w_bil, b_bil))
    assert out_bf16.shape == (B, DOUT)
    assert jnp.allclose(out_bf16, ref, rtol=1e-1, atol=1e-1), "bf16 mismatch vs reference"

    # NOTE: these shapes only check correctness (grid (1,1,1), a few KiB of data).
    # Benchmark at production B/Din/Dout so the K-streaming, VMEM sizing and megacore
    # (>=2 parallel tiles) choices are actually exercised.
    print("KERNEL_OK")
</pallas_src>

<mosaic_0001>
module attributes {stable_mosaic.version = 11 : i64} {
  func.func @square_kernel(%arg0: i32, %arg1: i32, %arg2: i32, %arg3: memref<8x32xf32, #tpu.memory_space<vmem>>, %arg4: memref<8x32xf32, #tpu.memory_space<vmem>>, %arg5: memref<32x16xf32, #tpu.memory_space<vmem>>, %arg6: memref<1024x16xf32, #tpu.memory_space<vmem>>, %arg7: memref<1x16xf32, #tpu.memory_space<vmem>>, %arg8: memref<8x16xf32, #tpu.memory_space<vmem>>, %arg9: memref<8x16xf32, #tpu.memory_space<vmem>>) attributes {dimension_semantics = [#tpu.dimension_semantics<parallel>, #tpu.dimension_semantics<parallel>, #tpu.dimension_semantics<arbitrary>], iteration_bounds = array<i64: 1, 1, 1>, scalar_prefetch = 0 : i64, scratch_operands = 1 : i64, tpu.core_type = #tpu.core_type<tc>, window_params = [{transform_indices = @transform_0, window_bounds = array<i64: 8, 32>}, {transform_indices = @transform_1, window_bounds = array<i64: 8, 32>}, {transform_indices = @transform_2, window_bounds = array<i64: 32, 16>}, {transform_indices = @transform_3, window_bounds = array<i64: 1024, 16>}, {transform_indices = @transform_4, window_bounds = array<i64: 1, 16>}, {transform_indices = @transform_5, window_bounds = array<i64: 8, 16>}]} {
    %c0_i32 = arith.constant 0 : i32
    %0 = arith.cmpi eq, %arg2, %c0_i32 : i32
    %1 = arith.extui %0 : i1 to i32
    %c0_i32_0 = arith.constant 0 : i32
    %2 = arith.cmpi ne, %1, %c0_i32_0 : i32
    scf.if %2 {
      %c0_12 = arith.constant 0 : index
      %c0_13 = arith.constant 0 : index
      %19 = vector.load %arg3[%c0_12, %c0_13] : memref<8x32xf32, #tpu.memory_space<vmem>>, vector<8x32xf32>
      %c0_14 = arith.constant 0 : index
      %c0_15 = arith.constant 0 : index
      %20 = vector.load %arg5[%c0_14, %c0_15] : memref<32x16xf32, #tpu.memory_space<vmem>>, vector<32x16xf32>
      %cst_16 = arith.constant dense<0.000000e+00> : vector<8x16xf32>
      %21 = tpu.matmul %19, %20, %cst_16 {dimension_numbers = #tpu.dot_dimension_numbers<[1], [0], [0], [1], [0, 0, 1, 1], [], []>} : vector<8x32xf32>, vector<32x16xf32>, vector<8x16xf32> -> vector<8x16xf32>
      %c0_17 = arith.constant 0 : index
      %c0_18 = arith.constant 0 : index
      %22 = vector.load %arg7[%c0_17, %c0_18] : memref<1x16xf32, #tpu.memory_space<vmem>>, vector<1x16xf32>
      %23 = vector.broadcast %22 : vector<1x16xf32> to vector<8x16xf32>
      %24 = arith.addf %21, %23 : vector<8x16xf32>
      %c0_19 = arith.constant 0 : index
      %c0_20 = arith.constant 0 : index
      %25 = vector.load %arg9[%c0_19, %c0_20] : memref<8x16xf32, #tpu.memory_space<vmem>>, vector<8x16xf32>
      tpu.vector_store %arg9[%c0_19, %c0_20], %24 {strides = array<i32>} : memref<8x16xf32, #tpu.memory_space<vmem>>, vector<8x16xf32>,
    } else {
    }
    %c0 = arith.constant 0 : index
    %c0_1 = arith.constant 0 : index
    %3 = vector.load %arg4[%c0, %c0_1] : memref<8x32xf32, #tpu.memory_space<vmem>>, vector<8x32xf32>
    %c0_2 = arith.constant 0 : index
    %c0_3 = arith.constant 0 : index
    %4 = vector.load %arg3[%c0_2, %c0_3] : memref<8x32xf32, #tpu.memory_space<vmem>>, vector<8x32xf32>
    %5 = vector.shape_cast %3 : vector<8x32xf32> to vector<8x32x1xf32>
    %6 = vector.shape_cast %4 : vector<8x32xf32> to vector<8x1x32xf32>
    %7 = vector.broadcast %5 : vector<8x32x1xf32> to vector<8x32x32xf32>
    %8 = vector.broadcast %6 : vector<8x1x32xf32> to vector<8x32x32xf32>
    %9 = arith.mulf %7, %8 : vector<8x32x32xf32>
    %10 = vector.shape_cast %9 : vector<8x32x32xf32> to vector<8x1024xf32>
    %c0_4 = arith.constant 0 : index
    %c0_5 = arith.constant 0 : index
    %11 = vector.load %arg9[%c0_4, %c0_5] : memref<8x16xf32, #tpu.memory_space<vmem>>, vector<8x16xf32>
    %c0_6 = arith.constant 0 : index
    %c0_7 = arith.constant 0 : index
    %12 = vector.load %arg6[%c0_6, %c0_7] : memref<1024x16xf32, #tpu.memory_space<vmem>>, vector<1024x16xf32>
    %cst = arith.constant dense<0.000000e+00> : vector<8x16xf32>
    %13 = tpu.matmul %10, %12, %cst {dimension_numbers = #tpu.dot_dimension_numbers<[1], [0], [0], [1], [0, 0, 1, 1], [], []>} : vector<8x1024xf32>, vector<1024x16xf32>, vector<8x16xf32> -> vector<8x16xf32>
    %14 = arith.addf %11, %13 : vector<8x16xf32>
    %c0_8 = arith.constant 0 : index
    %c0_9 = arith.constant 0 : index
    %15 = vector.load %arg9[%c0_8, %c0_9] : memref<8x16xf32, #tpu.memory_space<vmem>>, vector<8x16xf32>
    tpu.vector_store %arg9[%c0_8, %c0_9], %14 {strides = array<i32>} : memref<8x16xf32, #tpu.memory_space<vmem>>, vector<8x16xf32>,
    %c0_i32_10 = arith.constant 0 : i32
    %16 = arith.cmpi eq, %arg2, %c0_i32_10 : i32
    %17 = arith.extui %16 : i1 to i32
    %c0_i32_11 = arith.constant 0 : i32
    %18 = arith.cmpi ne, %17, %c0_i32_11 : i32
    scf.if %18 {
      %c0_12 = arith.constant 0 : index
      %c0_13 = arith.constant 0 : index
      %19 = vector.load %arg9[%c0_12, %c0_13] : memref<8x16xf32, #tpu.memory_space<vmem>>, vector<8x16xf32>
      %c0_14 = arith.constant 0 : index
      %c0_15 = arith.constant 0 : index
      %20 = vector.load %arg8[%c0_14, %c0_15] : memref<8x16xf32, #tpu.memory_space<vmem>>, vector<8x16xf32>
      tpu.vector_store %arg8[%c0_14, %c0_15], %19 {strides = array<i32>} : memref<8x16xf32, #tpu.memory_space<vmem>>, vector<8x16xf32>,
    } else {
    }
    return
  }
  func.func @transform_0(%arg0: i32, %arg1: i32, %arg2: i32) -> (i32, i32) {
    %c0_i32 = arith.constant 0 : i32
    %c0_i32_0 = arith.constant 0 : i32
    return %arg1, %c0_i32 : i32, i32
  }
  func.func @transform_1(%arg0: i32, %arg1: i32, %arg2: i32) -> (i32, i32) {
    %c0_i32 = arith.constant 0 : i32
    return %arg1, %arg2 : i32, i32
  }
  func.func @transform_2(%arg0: i32, %arg1: i32, %arg2: i32) -> (i32, i32) {
    %c0_i32 = arith.constant 0 : i32
    %c0_i32_0 = arith.constant 0 : i32
    return %c0_i32, %arg0 : i32, i32
  }
  func.func @transform_3(%arg0: i32, %arg1: i32, %arg2: i32) -> (i32, i32) {
    %c0_i32 = arith.constant 0 : i32
    return %arg2, %arg0 : i32, i32
  }
  func.func @transform_4(%arg0: i32, %arg1: i32, %arg2: i32) -> (i32, i32) {
    %c0_i32 = arith.constant 0 : i32
    %c0_i32_0 = arith.constant 0 : i32
    return %c0_i32, %arg0 : i32, i32
  }
  func.func @transform_5(%arg0: i32, %arg1: i32, %arg2: i32) -> (i32, i32) {
    %c0_i32 = arith.constant 0 : i32
    return %arg1, %arg0 : i32, i32
  }
}

</mosaic_0001>

<bundles_post_ra>
// kernel: tpu_custom_call.1
= control target key start
LH: loop header
LB: loop body
LE: loop exit
PB: predicated region body
PF: predicated region fallthrough
CT: control target
= control target key end

     0   :  { %v63_v0 = vlaneseq  ;;  %s2114_s0 = inlined_call_operand.vmem [shape: f32[8,32], index: 0, kind: input, shape index: {}]   ;;  %s2115_s1 = inlined_call_operand.vmem [shape: f32[8,32], index: 1, kind: input, shape index: {}]   ;;  %s2116_s2 = inlined_call_operand.vmem [shape: f32[32,16], index: 2, kind: input, shape index: {}]   ;;  %s2117_s3 = inlined_call_operand.vmem [shape: f32[1024,16], index: 3, kind: input, shape index: {}]   ;;  %s2118_s4 = inlined_call_operand.vmem [shape: f32[1,16], index: 4, kind: input, shape index: {}]   ;;  %s2119_s5 = inlined_call_operand.hbm [shape: f32[8,16], index: 5, kind: output, shape index: {}]  }
   0x1   :  { %10 = vsyncpa [#allocation4], 0  ;;  %v60_v2 = vld [vmem:[%s2115_s1] sm:$0xff]  ;;  %v1305_v30 = vmov 1983009808   ;;  %vm319_vm0 = vcmask 1047556  }
   0x2   :  { %v64_v1 = vshrl.u32 %v63_v0, 7  ;;  %v137_v3 = vperm.slane %v60_v2, 3  ;;  %v87_v4 = vperm.slane %v60_v2, 1  ;;  %v62_v5 = vperm.slane %v60_v2, 0  ;;  %v61_v21 = vld [vmem:[%s2114_s0] sm:$0xff]  ;;  %s1307_s21 = smov 96  }
   0x3   :  { %v162_v7 = vperm.slane %v60_v2, 4  ;;  %v187_v8 = vperm.slane %v60_v2, 5  ;;  %v212_v9 = vperm.slane %v60_v2, 6  ;;  %v112_v10 = vperm.slane %v60_v2, 2  ;;  %s1308_s22 = smov 64   ;;  %s1309_s23 = smov 32  }
   0x4   :  { %1213 = vset.pattern.permute.xlu2 %v64_v1  ;;  %1212 = vset.pattern.permute.xlu1 %v64_v1  ;;  %v71_v6 = vadd.s32 8, %v64_v1  ;;  %v237_v11 = vperm.slane %v60_v2, 7  ;;  %v77_v12 = vadd.s32 16, %v64_v1  ;;  %v83_v13 = vadd.s32 24, %v64_v1  ;;  %s1194_s29 = sshll.u32 %s2119_s5, 4  ;;  %s1195_s29 = int_to_ptr.hbm [resolvable:$true] %s1194_s29 }
   0x5   :  { %1210 = vset.pattern.permute.xlu0 %v64_v1  ;;  %v1349_v23 = vperm.slane %v61_v21, 0  ;;  %v263_v24 = vrot.slane %v61_v21, 1  ;;  %v264_v25 = vrot.slane %v61_v21, 2  ;;  %v265_v27 = vrot.slane %v61_v21, 3 }
   0x6   :  { %v324_v31 = vunpack.c.l.s4 %v1305_v30  ;;  %v266_v41 = vrot.slane %v61_v21, 4  ;;  %v268_v43 = vrot.slane %v61_v21, 6  ;;  %v267_v44 = vrot.slane %v61_v21, 5 }
   0x7   :  { %v1354_v29 = vperm.slane %v263_v24, 0  ;;  %v1356_v32 = vperm.slane %v264_v25, 0  ;;  %v1359_v35 = vperm.slane %v265_v27, 0  ;;  %v269_v59 = vrot.slane %v61_v21, 7 }
   0x8   :  { %v1364_v40 = vunpack.c.0.s8 %v324_v31  ;;  %v1371_v50 = vperm.slane %v266_v41, 0  ;;  %v1374_v53 = vperm.slane %v268_v43, 0  ;;  %v1376_v55 = vperm.slane %v267_v44, 0 }
   0x9   :  { %vm34_vm1 = vcmask 261120   ;;  %vm865_vm2 = vcmask 523264   ;;  %vm867_vm3 = vcmask 785408   ;;  %vm58_vm4 = vcmask 130048  }
   0xc   :  { %142 = vperm.xlu2 %1213, %v137_v3   ;;  %92 = vperm.xlu1 %1212, %v87_v4  }
   0xd   :  { %67 = vperm.xlu0 %1210, %v62_v5  }
  0x14   :  { %1214 = vset.pattern.permute.xlu2 %v71_v6  ;;  %167 = vperm.xlu1 %1212, %v162_v7  }
  0x15   :  { %1211 = vset.pattern.permute.xlu0 %v71_v6 }
  0x1c   :  { %148 = vperm.xlu2 %1214, %v137_v3   ;;  %192 = vperm.xlu1 %1212, %v187_v8  }
  0x1d   :  { %73 = vperm.xlu0 %1211, %v62_v5  }
  0x24   :  { %1215 = vset.pattern.permute.xlu2 %v64_v1  ;;  %1216 = vset.pattern.permute.xlu1 %v71_v6 }
  0x25   :  { %223 = vperm.xlu0 %1211, %v212_v9  }
  0x2c   :  { %217 = vperm.xlu2 %1215, %v212_v9   ;;  %98 = vperm.xlu1 %1216, %v87_v4  }
  0x2d   :  { %123 = vperm.xlu0 %1211, %v112_v10  }
  0x34   :  { %117 = vperm.xlu2 %1215, %v112_v10   ;;  %1217 = vset.pattern.permute.xlu1 %v64_v1 }
  0x35   :  { %173 = vperm.xlu0 %1211, %v162_v7  }
  0x3c   :  { %1218 = vset.pattern.permute.xlu2 %v71_v6  ;;  %242 = vperm.xlu1 %1217, %v237_v11  }
  0x3d   :  { %1221 = vset.pattern.permute.xlu0 %v77_v12 }
  0x44   :  { %248 = vperm.xlu2 %1218, %v237_v11   ;;  %1219 = vset.pattern.permute.xlu1 %v71_v6 }
  0x45   :  { %179 = vperm.xlu0 %1221, %v162_v7  }
  0x4c   :  { %1220 = vset.pattern.permute.xlu2 %v77_v12  ;;  %198 = vperm.xlu1 %1219, %v187_v8  }
  0x4d   :  { %229 = vperm.xlu0 %1221, %v212_v9  }
  0x54   :  { %104 = vperm.xlu2 %1220, %v87_v4   ;;  %1222 = vset.pattern.permute.xlu1 %v77_v12 }
  0x55   :  { %129 = vperm.xlu0 %1221, %v112_v10  }
  0x5c   :  { %154 = vperm.xlu2 %1220, %v137_v3   ;;  %79 = vperm.xlu1 %1222, %v62_v5  }
  0x5d   :  { %1226 = vset.pattern.permute.xlu0 %v83_v13 }
  0x64   :  { %204 = vperm.xlu2 %1220, %v187_v8   ;;  %1223 = vset.pattern.permute.xlu1 %v83_v13 }
  0x65   :  { %260 = vperm.xlu0 %1226, %v237_v11  }
  0x66   :  { %v143_v16 = vpop.permute.xlu2 %142 }
  0x67   :  { %v298_v52 = vmul.f32 %v1359_v35, %v143_v16 }
  0x69   :  { %v331_v63 = vrot.slane %v298_v52, 4 }
  0x6c   :  { %1224 = vset.pattern.permute.xlu2 %v83_v13  ;;  %160 = vperm.xlu1 %1223, %v137_v3  }
  0x74   :  { %110 = vperm.xlu2 %1224, %v87_v4   ;;  %235 = vperm.xlu1 %1223, %v212_v9  }
  0x76   :  { %v149_v19 = vpop.permute.xlu2 %148 }
  0x77   :  { %v299_v39 = vmul.f32 %v1359_v35, %v149_v19  ;;  %v1306_v19 = vmov 1934713408  }
  0x7c   :  { %1225 = vset.pattern.permute.xlu2 %v77_v12  ;;  %135 = vperm.xlu1 %1223, %v112_v10  }
  0x7e   :  { %v93_v14 = vpop.permute.xlu1 %92 }
  0x7f   :  { %v68_v15 = vpop.permute.xlu0 %67  ;;  %v290_v46 = vmul.f32 %v1354_v29, %v93_v14 }
  0x80   :  { %v286_v58 = vmul.f32 %v1349_v23, %v68_v15 }
  0x81   :  { %v333_v57 = vrot.slane %v290_v46, 4  ;;  %v332_v6 = vsel %vm319_vm0, %v331_v63, %v290_v46 }
  0x82   :  { %v321_v3 = vrot.slane %v286_v58, 4 }
  0x83   :  { %v334_v2 = vsel %vm319_vm0, %v298_v52, %v333_v57 }
  0x84   :  { %254 = vperm.xlu2 %1225, %v237_v11   ;;  %185 = vperm.xlu1 %1223, %v162_v7   ;;  %v342_v9 = vperm.slane %v334_v2, %v1364_v40 }
  0x86   :  { %v168_v17 = vpop.permute.xlu1 %167  ;;  %v218_v28 = vpop.permute.xlu2 %217 }
  0x87   :  { %v302_v62 = vmul.f32 %v1371_v50, %v168_v17  ;;  %v310_v0 = vmul.f32 %v1374_v53, %v218_v28 }
  0x89   :  { %v345_v7 = vrot.slane %v302_v62, 4  ;;  %v343_v10 = vrot.slane %v310_v0, 4 }
  0x8b   :  { %v346_v21 = vsel %vm319_vm0, %v310_v0, %v345_v7  ;;  %v344_v28 = vsel %vm319_vm0, %v343_v10, %v302_v62 }
  0x8c   :  { %1227 = vset.pattern.permute.xlu2 %v83_v13  ;;  %210 = vperm.xlu1 %1223, %v187_v8   ;;  %v443_v8 = vrot.slane %v299_v39, 4  ;;  %v354_v41 = vperm.slane %v346_v21, %v1364_v40 }
  0x8e   :  { %v193_v20 = vpop.permute.xlu1 %192  ;;  %v118_v54 = vpop.permute.xlu2 %117  ;;  %v405_v2 = vrot.slane %v354_v41, 4 }
  0x8f   :  { %v74_v18 = vpop.permute.xlu0 %73  ;;  %v294_v1 = vmul.f32 %v1356_v32, %v118_v54  ;;  %v306_v4 = vmul.f32 %v1376_v55, %v193_v20  ;;  %v372_v20 = vunpack.c.l.s4 %v1306_v19 }
  0x90   :  { %v1352_v26 = vmul.f32 %v1349_v23, %v74_v18  ;;  %v1397_v18 = vperm.slane %v332_v6, %v1364_v40 }
  0x91   :  { %v318_v11 = vrot.slane %v294_v1, 4  ;;  %v322_v14 = vsel %vm319_vm0, %v294_v1, %v321_v3  ;;  %v357_v15 = vrot.slane %v306_v4, 4 }
  0x92   :  { %v433_v33 = vrot.slane %v1352_v26, 4  ;;  %v330_v31 = vperm.slane %v322_v14, %v1364_v40  ;;  %v367_v57 = vrot.slane %v1397_v18, 4 }
  0x93   :  { %v320_v30 = vsel %vm319_vm0, %v318_v11, %v286_v58 }
  0x94   :  { %85 = vperm.xlu2 %1227, %v62_v5   ;;  %v1390_v5 = vperm.slane %v269_v59, 0  ;;  %v1420_v46 = vperm.slane %v320_v30, %v1364_v40  ;;  %v381_v52 = vrot.slane %v330_v31, 4 }
  0x96   :  { %v368_v6 = vsel %vm319_vm0, %v367_v57, %v1420_v46  ;;  %v382_v10 = vsel %vm319_vm0, %v342_v9, %v381_v52 }
  0x97   :  { %v1347_v22 = vpop.permute.xlu0 %223 }
  0x9e   :  { %v99_v34 = vpop.permute.xlu1 %98  ;;  %v249_v12 = vpop.permute.xlu2 %248 }
  0x9f   :  { %v291_v36 = vmul.f32 %v1354_v29, %v99_v34  ;;  %v124_v37 = vpop.permute.xlu0 %123 }
  0xa0   :  { %v295_v38 = vmul.f32 %v1356_v32, %v124_v37  ;;  %v379_v37 = vrot.slane %v342_v9, 4 }
  0xa1   :  { %v445_v42 = vrot.slane %v291_v36, 4  ;;  %v444_v24 = vsel %vm319_vm0, %v443_v8, %v291_v36 }
  0xa2   :  { %v434_v45 = vsel %vm319_vm0, %v295_v38, %v433_v33  ;;  %v431_v16 = vrot.slane %v295_v38, 4  ;;  %v311_v38 = vmul.f32 %v1374_v53, %v1347_v22 }
  0xa3   :  { %v446_v47 = vsel %vm319_vm0, %v299_v39, %v445_v42  ;;  %v442_v48 = vperm.slane %v434_v45, %v1364_v40  ;;  %v450_v42 = vperm.slane %v444_v24, %v1364_v40  ;;  %v1417_v45 = vperm.slane %v344_v28, %v1364_v40 }
  0xa4   :  { %v454_v49 = vperm.slane %v446_v47, %v1364_v40  ;;  %v432_v39 = vsel %vm319_vm0, %v431_v16, %v1352_v26  ;;  %v1423_v47 = vunpack.c.0.s8 %v372_v20  ;;  %v380_v26 = vsel %vm319_vm0, %v379_v37, %v330_v31 }
  0xa5   :  { %v493_v51 = vrot.slane %v442_v48, 4  ;;  %v455_v54 = vrot.slane %v311_v38, 4  ;;  %v479_v58 = vrot.slane %v450_v42, 4 }
  0xa6   :  { %v491_v56 = vrot.slane %v454_v49, 4  ;;  %v386_v0 = vperm.slane %v380_v26, %v1423_v47  ;;  %v1456_v16 = vperm.slane %v368_v6, %v1423_v47  ;;  %v390_v21 = vperm.slane %v382_v10, %v1423_v47 }
  0xa7   :  { %v1380_v60 = vsel %vm319_vm0, %v454_v49, %v493_v51  ;;  %v174_v34 = vpop.permute.xlu0 %173 }
  0xa8   :  { %v1383_v61 = vsel %vm319_vm0, %v491_v56, %v442_v48  ;;  %v303_v22 = vmul.f32 %v1371_v50, %v174_v34  ;;  %v438_v48 = vperm.slane %v432_v39, %v1364_v40  ;;  %v429_v26 = vrot.slane %v390_v21, 4 }
  0xa9   :  { %v498_v39 = vperm.slane %v1383_v61, %v1423_v47 }
  0xaa   :  { %v457_v63 = vrot.slane %v303_v22, 4  ;;  %v481_v3 = vrot.slane %v438_v48, 4  ;;  %v456_v7 = vsel %vm319_vm0, %v455_v54, %v303_v22 }
  0xab   :  { %v462_v9 = vperm.slane %v456_v7, %v1364_v40 }
  0xac   :  { %v482_v24 = vsel %vm319_vm0, %v450_v42, %v481_v3 }
  0xae   :  { %v243_v13 = vpop.permute.xlu1 %242  ;;  %v1433_v59 = vpop.permute.xlu2 %104 }
  0xaf   :  { %v314_v17 = vmul.f32 %v1390_v5, %v243_v13 }
  0xb1   :  { %v355_v25 = vrot.slane %v314_v17, 4  ;;  %v358_v27 = vsel %vm319_vm0, %v314_v17, %v357_v15  ;;  %v480_v15 = vsel %vm319_vm0, %v479_v58, %v438_v48 }
  0xb2   :  { %v366_v33 = vperm.slane %v358_v27, %v1364_v40  ;;  %v486_v28 = vperm.slane %v480_v15, %v1423_v47 }
  0xb3   :  { %v356_v36 = vsel %vm319_vm0, %v355_v25, %v306_v4  ;;  %v315_v4 = vmul.f32 %v1390_v5, %v249_v12  ;;  %v458_v12 = vsel %vm319_vm0, %v311_v38, %v457_v63  ;;  %v490_v38 = vperm.slane %v482_v24, %v1423_v47 }
  0xb4   :  { %v1414_v43 = vperm.slane %v356_v36, %v1364_v40  ;;  %v403_v44 = vrot.slane %v366_v33, 4  ;;  %v406_v14 = vsel %vm319_vm0, %v366_v33, %v405_v2  ;;  %v466_v31 = vperm.slane %v458_v12, %v1364_v40 }
  0xb5   :  { %v467_v19 = vrot.slane %v315_v4, 4  ;;  %v414_v27 = vperm.slane %v406_v14, %v1423_v47  ;;  %v502_v33 = vperm.slane %v1380_v60, %v1423_v47  ;;  %v505_v36 = vrot.slane %v462_v9, 4 }
  0xb6   :  { %v391_v49 = vrot.slane %v1414_v43, 4  ;;  %v404_v51 = vsel %vm319_vm0, %v403_v44, %v354_v41  ;;  %v155_v41 = vpop.permute.xlu2 %154  ;;  %v425_v44 = vrot.slane %v386_v0, 4  ;;  %v533_v61 = vrot.slane %v490_v38, 4 }
  0xb7   :  { %v1430_v56 = vperm.slane %v404_v51, %v1423_v47  ;;  %v1443_v8 = vpop.permute.xlu0 %179  ;;  %v427_v48 = vrot.slane %v414_v27, 4  ;;  %v517_v51 = vrot.slane %v466_v31, 4  ;;  %v537_v63 = vrot.slane %v498_v39, 4 }
  0xb8   :  { %v392_v62 = vsel %vm319_vm0, %v391_v49, %v1417_v45  ;;  %v529_v49 = vrot.slane %v486_v28, 4 }
  0xb9   :  { %v423_v1 = vrot.slane %v1430_v56, 4  ;;  %v1447_v11 = vperm.slane %v392_v62, %v1423_v47  ;;  %v541_v62 = vrot.slane %v502_v33, 4  ;;  %v428_v6 = vsel %vm319_vm0, %v427_v48, %v390_v21 }
  0xba   :  { %v426_v15 = vsel %vm319_vm0, %v1430_v56, %v425_v44 }
  0xbb   :  { %v1450_v13 = vsel %vm319_vm0, %v423_v1, %v386_v0  ;;  %v415_v17 = vrot.slane %v1447_v11, 4  ;;  %v430_v0 = vsel %vm319_vm0, %v414_v27, %v429_v26 }
  0xbd   :  { %v1467_v30 = vsel %vm319_vm0, %v415_v17, %v1456_v16 }
  0xbe   :  { %v199_v20 = vpop.permute.xlu1 %198 }
  0xbf   :  { %v307_v25 = vmul.f32 %v1376_v55, %v199_v20  ;;  %v230_v57 = vpop.permute.xlu0 %229 }
  0xc1   :  { %v468_v34 = vsel %vm319_vm0, %v467_v19, %v307_v25  ;;  %v469_v37 = vrot.slane %v307_v25, 4 }
  0xc2   :  { %v474_v42 = vperm.slane %v468_v34, %v1364_v40 }
  0xc3   :  { %v470_v22 = vsel %vm319_vm0, %v315_v4, %v469_v37 }
  0xc4   :  { %v478_v60 = vperm.slane %v470_v22, %v1364_v40  ;;  %v503_v52 = vrot.slane %v474_v42, 4  ;;  %v506_v54 = vsel %vm319_vm0, %v474_v42, %v505_v36  ;;  %v292_v22 = vmul.f32 %v1354_v29, %v1433_v59 }
  0xc5   :  { %v514_v58 = vperm.slane %v506_v54, %v1423_v47  ;;  %v369_v54 = vrot.slane %v1420_v46, 4 }
  0xc6   :  { %v515_v1 = vrot.slane %v478_v60, 4  ;;  %v504_v2 = vsel %vm319_vm0, %v503_v52, %v462_v9  ;;  %v518_v3 = vsel %vm319_vm0, %v478_v60, %v517_v51  ;;  %v557_v60 = vrot.slane %v292_v22, 4 }
  0xc7   :  { %v534_v4 = vsel %vm319_vm0, %v514_v58, %v533_v61  ;;  %v531_v7 = vrot.slane %v514_v58, 4  ;;  %v510_v10 = vperm.slane %v504_v2, %v1423_v47  ;;  %v526_v12 = vperm.slane %v518_v3, %v1423_v47  ;;  %v130_v26 = vpop.permute.xlu0 %129 }
  0xc8   :  { %v1238_v14 = vpack.i.bf16 %v534_v4, %v430_v0  ;;  %v516_v17 = vsel %vm319_vm0, %v515_v1, %v466_v31  ;;  %v296_v51 = vmul.f32 %v1356_v32, %v130_v26  ;;  %v370_v0 = vsel %vm319_vm0, %v1397_v18, %v369_v54 }
  0xc9   :  { %v532_v19 = vsel %vm319_vm0, %v531_v7, %v490_v38  ;;  %v530_v9 = vsel %vm319_vm0, %v510_v10, %v529_v49  ;;  %v527_v20 = vrot.slane %v510_v10, 4  ;;  %v522_v24 = vperm.slane %v516_v17, %v1423_v47  ;;  %v205_v38 = vpop.permute.xlu2 %204 }
  0xca   :  { %1239 = vrot.lane.b32.xlu1 %v1238_v14, %s1307_s21  ;;  %v1233_v21 = vpack.i.bf16 %v532_v19, %v428_v6  ;;  %v1228_v25 = vpack.i.bf16 %v530_v9, %v426_v15  ;;  %v1496_v27 = vsel %vm319_vm0, %v526_v12, %v541_v62  ;;  %v539_v56 = vrot.slane %v526_v12, 4 }
  0xcb   :  { %v535_v34 = vrot.slane %v522_v24, 4  ;;  %v1499_v37 = vsel %vm319_vm0, %v522_v24, %v537_v63  ;;  %v1502_v31 = vsel %vm319_vm0, %v527_v20, %v486_v28  ;;  %v304_v49 = vmul.f32 %v1371_v50, %v1443_v8 }
  0xcc   :  { %1234 = vrot.lane.b32.xlu0 %v1233_v21, %s1308_s22  ;;  %1229 = vrot.lane.b32.xlu2 %v1228_v25, %s1309_s23  ;;  %v1507_v36 = vsel %vm319_vm0, %v539_v56, %v502_v33  ;;  %v312_v62 = vmul.f32 %v1374_v53, %v230_v57  ;;  %v393_v63 = vrot.slane %v1417_v45, 4  ;;  %v378_v57 = vperm.slane %v370_v0, %v1423_v47 }
  0xcd   :  { %v1510_v42 = vsel %vm319_vm0, %v535_v34, %v498_v39  ;;  %v300_v39 = vmul.f32 %v1359_v35, %v155_v41  ;;  %v569_v58 = vrot.slane %v304_v49, 4  ;;  %v308_v41 = vmul.f32 %v1376_v55, %v205_v38 }
  0xce   :  { %v80_v44 = vpop.permute.xlu1 %79  ;;  %v394_v3 = vsel %vm319_vm0, %v1414_v43, %v393_v63  ;;  %v567_v45 = vrot.slane %v312_v62, 4  ;;  %v543_v7 = vrot.slane %v296_v51, 4  ;;  %v417_v43 = vrot.slane %v1456_v16, 4 }
  0xcf   :  { %v288_v28 = vmul.f32 %v1349_v23, %v80_v44  ;;  %v558_v59 = vsel %vm319_vm0, %v300_v39, %v557_v60  ;;  %v570_v1 = vsel %vm319_vm0, %v312_v62, %v569_v58  ;;  %v555_v46 = vrot.slane %v300_v39, 4 }
  0xd0   :  { %v566_v8 = vperm.slane %v558_v59, %v1364_v40  ;;  %v578_v4 = vperm.slane %v570_v1, %v1364_v40  ;;  %v581_v15 = vrot.slane %v308_v41, 4  ;;  %v402_v18 = vperm.slane %v394_v3, %v1423_v47 }
  0xd1   :  { %v545_v48 = vrot.slane %v288_v28, 4  ;;  %v111_v52 = vpop.permute.xlu2 %110  ;;  %v556_v19 = vsel %vm319_vm0, %v555_v46, %v292_v22  ;;  %v421_v25 = vrot.slane %v378_v57, 4  ;;  %v568_v56 = vsel %vm319_vm0, %v567_v45, %v304_v49 }
  0xd2   :  { %v603_v6 = vrot.slane %v566_v8, 4  ;;  %v629_v20 = vrot.slane %v578_v4, 4  ;;  %v544_v34 = vsel %vm319_vm0, %v543_v7, %v288_v28  ;;  %v1546_v26 = vperm.slane %v556_v19, %v1364_v40 }
  0xd3   :  { %v546_v33 = vsel %vm319_vm0, %v296_v51, %v545_v48  ;;  %v422_v22 = vsel %vm319_vm0, %v402_v18, %v421_v25  ;;  %v293_v51 = vmul.f32 %v1354_v29, %v111_v52  ;;  %v419_v28 = vrot.slane %v402_v18, 4 }
  0xd4   :  { %v554_v61 = vperm.slane %v546_v33, %v1364_v40  ;;  %v1556_v33 = vperm.slane %v568_v56, %v1364_v40  ;;  %v1559_v39 = vperm.slane %v544_v34, %v1364_v40  ;;  %v591_v63 = vrot.slane %v1546_v26, 4 }
  0xd6   :  { %v605_v2 = vrot.slane %v554_v61, 4  ;;  %v604_v9 = vsel %vm319_vm0, %v603_v6, %v554_v61  ;;  %v592_v7 = vsel %vm319_vm0, %v591_v63, %v1559_v39 }
  0xd7   :  { %v610_v48 = vperm.slane %v604_v9, %v1423_v47 }
  0xd8   :  { %v606_v17 = vsel %vm319_vm0, %v566_v8, %v605_v2  ;;  %v418_v8 = vsel %vm319_vm0, %v1447_v11, %v417_v43  ;;  %v420_v11 = vsel %vm319_vm0, %v419_v28, %v378_v57  ;;  %v1590_v57 = vperm.slane %v592_v7, %v1423_v47 }
  0xd9   :  { %v614_v44 = vperm.slane %v606_v17, %v1423_v47  ;;  %v649_v0 = vrot.slane %v610_v48, 4 }
  0xdb   :  { %v653_v52 = vrot.slane %v614_v44, 4 }
  0xde   :  { %v255_v10 = vpop.permute.xlu2 %254  ;;  %v161_v14 = vpop.permute.xlu1 %160 }
  0xdf   :  { %v316_v12 = vmul.f32 %v1390_v5, %v255_v10  ;;  %v301_v54 = vmul.f32 %v1359_v35, %v161_v14 }
  0xe1   :  { %v579_v24 = vrot.slane %v316_v12, 4  ;;  %v582_v21 = vsel %vm319_vm0, %v316_v12, %v581_v15  ;;  %v667_v3 = vrot.slane %v301_v54, 4 }
  0xe2   :  { %v590_v38 = vperm.slane %v582_v21, %v1364_v40 }
  0xe3   :  { %v580_v16 = vsel %vm319_vm0, %v579_v24, %v308_v41  ;;  %v669_v41 = vrot.slane %v293_v51, 4  ;;  %v668_v17 = vsel %vm319_vm0, %v667_v3, %v293_v51  ;;  %v593_v3 = vrot.slane %v1559_v39, 4 }
  0xe4   :  { %v1553_v60 = vperm.slane %v580_v16, %v1364_v40  ;;  %v627_v49 = vrot.slane %v590_v38, 4  ;;  %v630_v58 = vsel %vm319_vm0, %v590_v38, %v629_v20  ;;  %v674_v56 = vperm.slane %v668_v17, %v1364_v40 }
  0xe5   :  { %v638_v29 = vperm.slane %v630_v58, %v1423_v47  ;;  %v670_v19 = vsel %vm319_vm0, %v301_v54, %v669_v41  ;;  %v594_v39 = vsel %vm319_vm0, %v1546_v26, %v593_v3  ;;  %v917_v3 = vld [vmem:[%s2117_s3 + $0xd0] sm:$0xff] }
  0xe6   :  { %v615_v59 = vrot.slane %v1553_v60, 4  ;;  %v236_v61 = vpop.permute.xlu1 %235  ;;  %v628_v62 = vsel %vm319_vm0, %v627_v49, %v578_v4  ;;  %v678_v34 = vperm.slane %v670_v19, %v1364_v40 }
  0xe7   :  { %v634_v1 = vperm.slane %v628_v62, %v1423_v47  ;;  %v654_v35 = vsel %vm319_vm0, %v638_v29, %v653_v52  ;;  %v651_v2 = vrot.slane %v638_v29, 4  ;;  %v313_v49 = vmul.f32 %v1374_v53, %v236_v61  ;;  %v261_v29 = vpop.permute.xlu0 %260  ;;  %v922_v61 = vld [vmem:[%s2117_s3 + $0xf8] sm:$0xff] }
  0xe8   :  { %v616_v46 = vsel %vm319_vm0, %v615_v59, %v1556_v33  ;;  %v1253_v6 = vpack.i.bf16 %v654_v35, %v422_v22  ;;  %v715_v51 = vrot.slane %v678_v34, 4  ;;  %v317_v41 = vmul.f32 %v1390_v5, %v261_v29  ;;  %v938_v35 = vld [vmem:[%s2117_s3 + $0x178] sm:$0xff]  ;;  %1039 = vmatpush.msra.mxu2 %v922_v61  ;;  %v937_v5 = vld [vmem:[%s2117_s3 + $0x170] sm:$0xff] }
  0xe9   :  { %v647_v45 = vrot.slane %v634_v1, 4  ;;  %v650_v4 = vsel %vm319_vm0, %v634_v1, %v649_v0  ;;  %v652_v10 = vsel %vm319_vm0, %v651_v2, %v614_v44  ;;  %v1580_v12 = vperm.slane %v616_v46, %v1423_v47  ;;  %1059 = vmatpush.msra.mxu3 %v938_v35  ;;  %v918_v35 = vld [vmem:[%s2117_s3 + $0xd8] sm:$0xff] }
  0xea   :  { %v1243_v14 = vpack.i.bf16 %v650_v4, %v418_v8  ;;  %1254 = vrot.lane.b32.xlu1 %v1253_v6, %s1307_s21  ;;  %v1248_v15 = vpack.i.bf16 %v652_v10, %v420_v11  ;;  %v679_v1 = vrot.slane %v313_v49, 4  ;;  %v691_v46 = vrot.slane %v317_v41, 4 }
  0xeb   :  { %v1583_v18 = vsel %vm319_vm0, %v647_v45, %v610_v48  ;;  %v639_v43 = vrot.slane %v1580_v12, 4  ;;  %v703_v48 = vrot.slane %v674_v56, 4  ;;  %1060 = vmatpush.msra.mxu3 %v937_v5 }
  0xec   :  { %1244 = vrot.lane.b32.xlu2 %v1243_v14, %s1309_s23  ;;  %1249 = vrot.lane.b32.xlu0 %v1248_v15, %s1308_s22 }
  0xed   :  { %v1597_v25 = vsel %vm319_vm0, %v639_v43, %v1590_v57  ;;  %v617_v43 = vrot.slane %v1556_v33, 4 }
  0xee   :  { %v86_v9 = vpop.permute.xlu2 %85  ;;  %v136_v20 = vpop.permute.xlu1 %135 }
  0xef   :  { %v289_v24 = vmul.f32 %v1349_v23, %v86_v9  ;;  %v297_v21 = vmul.f32 %v1356_v32, %v136_v20  ;;  %v618_v26 = vsel %vm319_vm0, %v1553_v60, %v617_v43  ;;  %v936_v60 = vld [vmem:[%s2117_s3 + $0x168] sm:$0xff]  ;;  %v930_v43 = vld [vmem:[%s2117_s3 + $0x138] sm:$0xff] }
  0xf0   :  { %1061 = vmatpush.msra.mxu3 %v936_v60  ;;  %v903_v60 = vld [vmem:[%s2117_s3 + $0x60] sm:$0xff] }
  0xf1   :  { %v657_v38 = vrot.slane %v289_v24, 4  ;;  %v655_v44 = vrot.slane %v297_v21, 4 }
  0xf3   :  { %v656_v16 = vsel %vm319_vm0, %v655_v44, %v289_v24  ;;  %v658_v22 = vsel %vm319_vm0, %v297_v21, %v657_v38 }
  0xf4   :  { %v662_v23 = vperm.slane %v656_v16, %v1364_v40  ;;  %v666_v32 = vperm.slane %v658_v22, %v1364_v40  ;;  %v1644_v16 = vperm.slane %v594_v39, %v1423_v47  ;;  %v914_v39 = vld [vmem:[%s2117_s3 + $0xb8] sm:$0xff] }
  0xf6   :  { %v705_v28 = vrot.slane %v662_v23, 4  ;;  %v716_v54 = vsel %vm319_vm0, %v715_v51, %v666_v32  ;;  %v717_v58 = vrot.slane %v666_v32, 4  ;;  %v186_v59 = vpop.permute.xlu1 %185  ;;  %v704_v52 = vsel %vm319_vm0, %v703_v48, %v662_v23 }
  0xf7   :  { %v305_v62 = vmul.f32 %v1371_v50, %v186_v59  ;;  %v921_v50 = vld [vmem:[%s2117_s3 + $0xf0] sm:$0xff]  ;;  %v710_v19 = vperm.slane %v704_v52, %v1423_v47  ;;  %v722_v9 = vperm.slane %v716_v54, %v1423_v47  ;;  %v919_v54 = vld [vmem:[%s2117_s3 + $0xe0] sm:$0xff] }
  0xf8   :  { %v706_v63 = vsel %vm319_vm0, %v674_v56, %v705_v28  ;;  %v718_v8 = vsel %vm319_vm0, %v678_v34, %v717_v58  ;;  %1040 = vmatpush.msra.mxu2 %v921_v50  ;;  %v920_v28 = vld [vmem:[%s2117_s3 + $0xe8] sm:$0xff]  ;;  %v934_v50 = vld [vmem:[%s2117_s3 + $0x158] sm:$0xff] }
  0xf9   :  { %v681_v0 = vrot.slane %v305_v62, 4  ;;  %v680_v53 = vsel %vm319_vm0, %v679_v1, %v305_v62  ;;  %v714_v14 = vperm.slane %v706_v63, %v1423_v47  ;;  %v726_v20 = vperm.slane %v718_v8, %v1423_v47  ;;  %v935_v62 = vld [vmem:[%s2117_s3 + $0x160] sm:$0xff] }
  0xfa   :  { %v686_v6 = vperm.slane %v680_v53, %v1364_v40  ;;  %v753_v48 = vrot.slane %v710_v19, 4  ;;  %v761_v29 = vrot.slane %v722_v9, 4  ;;  %1041 = vmatpush.msra.mxu2 %v920_v28  ;;  %1062 = vmatpush.msra.mxu3 %v935_v62  ;;  %v984_v28 = vld [vmem:[%s2117_s3 + $0x2e8] sm:$0xff] }
  0xfb   :  { %v682_v2 = vsel %vm319_vm0, %v313_v49, %v681_v0  ;;  %v757_v44 = vrot.slane %v714_v14, 4  ;;  %v765_v52 = vrot.slane %v726_v20, 4  ;;  %v27_v62 = vld [vmem:[%s2116_s2 + $0x8] sm:$0xff] }
  0xfc   :  { %v690_v7 = vperm.slane %v682_v2, %v1364_v40  ;;  %v729_v15 = vrot.slane %v686_v6, 4  ;;  %1042 = vmatpush.msra.mxu2 %v919_v54  ;;  %v626_v2 = vperm.slane %v618_v26, %v1423_v47  ;;  %1063 = vmatpush.msra.mxu3 %v934_v50  ;;  %v908_v26 = vld [vmem:[%s2117_s3 + $0x88] sm:$0xff]  ;;  %v983_v54 = vld [vmem:[%s2117_s3 + $0x2e0] sm:$0xff]  ;;  %v898_v50 = vld [vmem:[%s2117_s3 + $0x38] sm:$0xff] }
  0xfe   :  { %v211_v45 = vpop.permute.xlu1 %210  ;;  %v741_v24 = vrot.slane %v690_v7, 4  ;;  %1043 = vmatpush.msra.mxu2 %v918_v35  ;;  %v953_v35 = vld [vmem:[%s2117_s3 + $0x1f0] sm:$0xff] }
  0xff   :  { %v309_v4 = vmul.f32 %v1376_v55, %v211_v45  ;;  %v916_v45 = vld [vmem:[%s2117_s3 + $0xc8] sm:$0xff] }
 0x100   :  { %1044 = vmatpush.msra.mxu2 %v917_v3  ;;  %v951_v3 = vld [vmem:[%s2117_s3 + $0x1e0] sm:$0xff] }
 0x101   :  { %v692_v11 = vsel %vm319_vm0, %v691_v46, %v309_v4  ;;  %v693_v10 = vrot.slane %v309_v4, 4  ;;  %v932_v4 = vld [vmem:[%s2117_s3 + $0x148] sm:$0xff] }
 0x102   :  { %v698_v17 = vperm.slane %v692_v11, %v1364_v40  ;;  %v643_v11 = vrot.slane %v626_v2, 4  ;;  %1045 = vmatpush.msra.mxu2 %v916_v45  ;;  %v976_v45 = vld [vmem:[%s2117_s3 + $0x2a8] sm:$0xff] }
 0x103   :  { %v694_v55 = vsel %vm319_vm0, %v317_v41, %v693_v10  ;;  %v641_v10 = vrot.slane %v1590_v57, 4 }
 0x104   :  { %v702_v21 = vperm.slane %v694_v55, %v1364_v40  ;;  %v727_v56 = vrot.slane %v698_v17, 4  ;;  %v730_v34 = vsel %vm319_vm0, %v698_v17, %v729_v15  ;;  %v931_v15 = vld [vmem:[%s2117_s3 + $0x140] sm:$0xff]  ;;  %v644_v55 = vsel %vm319_vm0, %v643_v11, %v1644_v16 }
 0x105   :  { %v738_v38 = vperm.slane %v730_v34, %v1423_v47  ;;  %v910_v34 = vld [vmem:[%s2117_s3 + $0x98] sm:$0xff]  ;;  %v975_v11 = vld [vmem:[%s2117_s3 + $0x2a0] sm:$0xff] }
 0x106   :  { %v739_v33 = vrot.slane %v702_v21, 4  ;;  %v728_v22 = vsel %vm319_vm0, %v727_v56, %v686_v6  ;;  %v742_v51 = vsel %vm319_vm0, %v702_v21, %v741_v24  ;;  %v928_v24 = vld [vmem:[%s2117_s3 + $0x128] sm:$0xff]  ;;  %v911_v21 = vld [vmem:[%s2117_s3 + $0xa0] sm:$0xff] }
 0x107   :  { %v758_v40 = vsel %vm319_vm0, %v738_v38, %v757_v44  ;;  %v755_v23 = vrot.slane %v738_v38, 4  ;;  %v734_v32 = vperm.slane %v728_v22, %v1423_v47  ;;  %v750_v49 = vperm.slane %v742_v51, %v1423_v47  ;;  %v927_v56 = vld [vmem:[%s2117_s3 + $0x120] sm:$0xff]  ;;  %v926_v38 = vld [vmem:[%s2117_s3 + $0x118] sm:$0xff]  ;;  %v909_v44 = vld [vmem:[%s2117_s3 + $0x90] sm:$0xff] }
 0x108   :  { %v1268_v58 = vpack.i.bf16 %v758_v40, %v1496_v27  ;;  %v740_v59 = vsel %vm319_vm0, %v739_v33, %v690_v7  ;;  %v645_v7 = vrot.slane %v1644_v16, 4  ;;  %v925_v16 = vld [vmem:[%s2117_s3 + $0x110] sm:$0xff]  ;;  %v924_v33 = vld [vmem:[%s2117_s3 + $0x108] sm:$0xff]  ;;  %v907_v22 = vld [vmem:[%s2117_s3 + $0x80] sm:$0xff] }
 0x109   :  { %v756_v63 = vsel %vm319_vm0, %v755_v23, %v714_v14  ;;  %v754_v8 = vsel %vm319_vm0, %v734_v32, %v753_v48  ;;  %v751_v1 = vrot.slane %v734_v32, 4  ;;  %v746_v0 = vperm.slane %v740_v59, %v1423_v47  ;;  %v933_v47 = vld [vmem:[%s2117_s3 + $0x150] sm:$0xff]  ;;  %v915_v14 = vld [vmem:[%s2117_s3 + $0xc0] sm:$0xff]  ;;  %v906_v51 = vld [vmem:[%s2117_s3 + $0x78] sm:$0xff] }
 0x10a   :  { %1269 = vrot.lane.b32.xlu1 %v1268_v58, %s1307_s21  ;;  %v1263_v27 = vpack.i.bf16 %v756_v63, %v1507_v36  ;;  %v1258_v41 = vpack.i.bf16 %v754_v8, %v1499_v37  ;;  %v766_v53 = vsel %vm319_vm0, %v750_v49, %v765_v52  ;;  %v763_v61 = vrot.slane %v750_v49, 4  ;;  %1064 = vmatpush.msra.mxu3 %v933_v47  ;;  %v923_v48 = vld [vmem:[%s2117_s3 + $0x100] sm:$0xff]  ;;  %v986_v40 = vld [vmem:[%s2117_s3 + $0x2f8] sm:$0xff]  ;;  %v905_v23 = vld [vmem:[%s2117_s3 + $0x70] sm:$0xff] }
 0x10b   :  { %v762_v46 = vsel %vm319_vm0, %v746_v0, %v761_v29  ;;  %v759_v36 = vrot.slane %v746_v0, 4  ;;  %v1683_v37 = vsel %vm319_vm0, %v751_v1, %v710_v19  ;;  %v646_v17 = vsel %vm319_vm0, %v626_v2, %v645_v7  ;;  %1046 = vmatpush.msra.mxu2 %v915_v14  ;;  %1019 = vmatpush.msra.mxu1 %v906_v51  ;;  %v985_v32 = vld [vmem:[%s2117_s3 + $0x2f0] sm:$0xff]  ;;  %v904_v49 = vld [vmem:[%s2117_s3 + $0x68] sm:$0xff]  ;;  %v29_v58 = vld [vmem:[%s2116_s2 + $0x18] sm:$0xff] }
 0x10c   :  { %1264 = vrot.lane.b32.xlu0 %v1263_v27, %s1308_s22  ;;  %1259 = vrot.lane.b32.xlu2 %v1258_v41, %s1309_s23  ;;  %v764_v5 = vsel %vm319_vm0, %v763_v61, %v726_v20  ;;  %v642_v19 = vsel %vm319_vm0, %v1580_v12, %v641_v10  ;;  %v913_v12 = vld [vmem:[%s2117_s3 + $0xb0] sm:$0xff]  ;;  %v912_v20 = vld [vmem:[%s2117_s3 + $0xa8] sm:$0xff] }
 0x10d   :  { %v1695_v6 = vsel %vm319_vm0, %v759_v36, %v722_v9  ;;  %1065 = vmatpush.msra.mxu3 %v932_v4  ;;  %v1273_v57 = vpack.i.bf16 %v762_v46, %v642_v19  ;;  %v929_v9 = vld [vmem:[%s2117_s3 + $0x130] sm:$0xff]  ;;  %1047 = vmatpush.msra.mxu2 %v914_v39  ;;  %v902_v59 = vld [vmem:[%s2117_s3 + $0x58] sm:$0xff]  ;;  %v26_v1 = vld [vmem:[%s2116_s2] sm:$0xff] }
 0x10e   :  { %1020 = vmatpush.msra.mxu1 %v905_v23  ;;  %50 = vmatpush.msra.mxu0 %v29_v58  ;;  %v982_v29 = vld [vmem:[%s2117_s3 + $0x2d8] sm:$0xff]  ;;  %v28_v52 = vld [vmem:[%s2116_s2 + $0x10] sm:$0xff]  ;;  %v900_v0 = vld [vmem:[%s2117_s3 + $0x48] sm:$0xff] }
 0x10f   :  { %1066 = vmatpush.msra.mxu3 %v931_v15  ;;  %1048 = vmatpush.msra.mxu2 %v913_v12  ;;  %v901_v63 = vld [vmem:[%s2117_s3 + $0x50] sm:$0xff]  ;;  %v980_v27 = vld [vmem:[%s2117_s3 + $0x2c8] sm:$0xff]  ;;  %v954_v41 = vld [vmem:[%s2117_s3 + $0x1f8] sm:$0xff] }
 0x110   :  { %1021 = vmatpush.msra.mxu1 %v904_v49  ;;  %51 = vmatpush.msra.mxu0 %v28_v52  ;;  %v981_v8 = vld [vmem:[%s2117_s3 + $0x2d0] sm:$0xff]  ;;  %v979_v61 = vld [vmem:[%s2117_s3 + $0x2c0] sm:$0xff]  ;;  %v978_v2 = vld [vmem:[%s2117_s3 + $0x2b8] sm:$0xff] }
 0x111   :  { %1067 = vmatpush.msra.mxu3 %v930_v43  ;;  %1049 = vmatpush.msra.mxu2 %v912_v20  ;;  %v952_v46 = vld [vmem:[%s2117_s3 + $0x1e8] sm:$0xff]  ;;  %v897_v36 = vld [vmem:[%s2117_s3 + $0x30] sm:$0xff]  ;;  %v950_v4 = vld [vmem:[%s2117_s3 + $0x1d8] sm:$0xff] }
 0x112   :  { %824 = vrot.lane.b32.xlu1 %v646_v17, %s1307_s21  ;;  %1022 = vmatpush.msra.mxu1 %v903_v60  ;;  %v896_v47 = vld [vmem:[%s2117_s3 + $0x28] sm:$0xff]  ;;  %v895_v7 = vld [vmem:[%s2117_s3 + $0x20] sm:$0xff]  ;;  %v894_v14 = vld [vmem:[%s2117_s3 + $0x18] sm:$0xff] }
 0x113   :  { %1068 = vmatpush.msra.mxu3 %v929_v9  ;;  %1050 = vmatpush.msra.mxu2 %v911_v21  ;;  %v974_v15 = vld [vmem:[%s2117_s3 + $0x298] sm:$0xff]  ;;  %v949_v39 = vld [vmem:[%s2117_s3 + $0x1d0] sm:$0xff]  ;;  %v943_v60 = vld [vmem:[%s2117_s3 + $0x1a0] sm:$0xff] }
 0x114   :  { %820 = vrot.lane.b32.xlu0 %v644_v55, %s1308_s22  ;;  %1274 = vrot.lane.b32.xlu2 %v1273_v57, %s1309_s23  ;;  %v893_v55 = vld [vmem:[%s2117_s3 + $0x10] sm:$0xff]  ;;  %v970_v58 = vld [vmem:[%s2117_s3 + $0x278] sm:$0xff] }
 0x115   :  { %1069 = vmatpush.msra.mxu3 %v928_v24  ;;  %1051 = vmatpush.msra.mxu2 %v910_v34  ;;  %v973_v12 = vld [vmem:[%s2117_s3 + $0x290] sm:$0xff]  ;;  %v948_v24 = vld [vmem:[%s2117_s3 + $0x1c8] sm:$0xff] }
 0x116   :  { %1023 = vmatpush.msra.mxu1 %v902_v59  ;;  %52 = vmatpush.msra.mxu0 %v27_v62  ;;  %v945_v23 = vld [vmem:[%s2117_s3 + $0x1b0] sm:$0xff]  ;;  %v999_v59 = vld [vmem:[%s2117_s3 + $0x360] sm:$0xff]  ;;  %v998_v62 = vld [vmem:[%s2117_s3 + $0x358] sm:$0xff] }
 0x117   :  { %1070 = vmatpush.msra.mxu3 %v927_v56  ;;  %1052 = vmatpush.msra.mxu2 %v909_v44  ;;  %v892_v44 = vld [vmem:[%s2117_s3 + $0x8] sm:$0xff]  ;;  %v1001_v49 = vld [vmem:[%s2117_s3 + $0x370] sm:$0xff] }
 0x118   :  { %1024 = vmatpush.msra.mxu1 %v901_v63  ;;  %53 = vmatpush.msra.mxu0 %v26_v1  ;;  %v969_v52 = vld [vmem:[%s2117_s3 + $0x270] sm:$0xff]  ;;  %v968_v63 = vld [vmem:[%s2117_s3 + $0x268] sm:$0xff] }
 0x119   :  { %1071 = vmatpush.msra.mxu3 %v926_v38  ;;  %1053 = vmatpush.msra.mxu2 %v908_v26  ;;  %v972_v26 = vld [vmem:[%s2117_s3 + $0x288] sm:$0xff]  ;;  %v997_v1 = vld [vmem:[%s2117_s3 + $0x350] sm:$0xff] }
 0x11a   :  { %1025 = vmatpush.msra.mxu1 %v900_v0  ;;  %1079 = vmatpush.msrb.mxu0 %v954_v41  ;;  %v940_v0 = vld [vmem:[%s2117_s3 + $0x188] sm:$0xff]  ;;  %v967_v41 = vld [vmem:[%s2117_s3 + $0x260] sm:$0xff] }
 0x11b   :  { %1072 = vmatpush.msra.mxu3 %v925_v16  ;;  %1054 = vmatpush.msra.mxu2 %v907_v22  ;;  %v947_v16 = vld [vmem:[%s2117_s3 + $0x1c0] sm:$0xff]  ;;  %v946_v22 = vld [vmem:[%s2117_s3 + $0x1b8] sm:$0xff] }
 0x11c   :  { %860 = vrot.lane.b32.xlu0 %v766_v53, %s1307_s21  ;;  %856 = vrot.lane.b32.xlu2 %v764_v5, %s1308_s22  ;;  %v899_v53 = vld [vmem:[%s2117_s3 + $0x40] sm:$0xff]  ;;  %v977_v5 = vld [vmem:[%s2117_s3 + $0x2b0] sm:$0xff] }
 0x11d   :  { %1073 = vmatpush.msra.mxu3 %v924_v33  ;;  %1119 = vmatpush.msrb.mxu2 %v986_v40  ;;  %v971_v40 = vld [vmem:[%s2117_s3 + $0x280] sm:$0xff] }
 0x11e   :  { %1026 = vmatpush.msra.mxu1 %v899_v53  ;;  %1080 = vmatpush.msrb.mxu0 %v953_v35  ;;  %v996_v53 = vld [vmem:[%s2117_s3 + $0x348] sm:$0xff]  ;;  %v1018_v35 = vld [vmem:[%s2117_s3 + $0x3f8] sm:$0xff] }
 0x11f   :  { %1074 = vmatpush.msra.mxu3 %v923_v48  ;;  %1120 = vmatpush.msrb.mxu2 %v985_v32  ;;  %v1002_v32 = vld [vmem:[%s2117_s3 + $0x378] sm:$0xff] }
 0x120   :  { %1027 = vmatpush.msra.mxu1 %v898_v50  ;;  %1081 = vmatpush.msrb.mxu0 %v952_v46  ;;  %v966_v50 = vld [vmem:[%s2117_s3 + $0x258] sm:$0xff]  ;;  %v1017_v46 = vld [vmem:[%s2117_s3 + $0x3f0] sm:$0xff] }
 0x121   :  { %1121 = vmatpush.msrb.mxu2 %v984_v28  ;;  %1139 = vmatpush.msrb.mxu3 %v1002_v32  ;;  %v944_v28 = vld [vmem:[%s2117_s3 + $0x1a8] sm:$0xff] }
 0x122   :  { %1028 = vmatpush.msra.mxu1 %v897_v36  ;;  %1082 = vmatpush.msrb.mxu0 %v951_v3  ;;  %v965_v36 = vld [vmem:[%s2117_s3 + $0x250] sm:$0xff]  ;;  %v964_v3 = vld [vmem:[%s2117_s3 + $0x248] sm:$0xff] }
 0x123   :  { %1122 = vmatpush.msrb.mxu2 %v983_v54  ;;  %1140 = vmatpush.msrb.mxu3 %v1001_v49  ;;  %v1000_v54 = vld [vmem:[%s2117_s3 + $0x368] sm:$0xff] }
 0x124   :  { %1029 = vmatpush.msra.mxu1 %v896_v47  ;;  %1083 = vmatpush.msrb.mxu0 %v950_v4  ;;  %v1016_v47 = vld [vmem:[%s2117_s3 + $0x3e8] sm:$0xff]  ;;  %v1015_v4 = vld [vmem:[%s2117_s3 + $0x3e0] sm:$0xff] }
 0x125   :  { %1123 = vmatpush.msrb.mxu2 %v982_v29  ;;  %1141 = vmatpush.msrb.mxu3 %v1000_v54  ;;  %v942_v29 = vld [vmem:[%s2117_s3 + $0x198] sm:$0xff]  ;;  %v1007_v54 = vld [vmem:[%s2117_s3 + $0x3a0] sm:$0xff] }
 0x126   :  { %v1230_v10 = vpop.permute.xlu2 %1229  ;;  %1030 = vmatpush.msra.mxu1 %v895_v7  ;;  %1084 = vmatpush.msrb.mxu0 %v949_v39  ;;  %v963_v7 = vld [vmem:[%s2117_s3 + $0x240] sm:$0xff]  ;;  %v990_v39 = vld [vmem:[%s2117_s3 + $0x318] sm:$0xff] }
 0x127   :  { %1124 = vmatpush.msrb.mxu2 %v981_v8  ;;  %v1232_v17 = vunpack.i.h.bf16 %v1230_v10  ;;  %v1231_v19 = vunpack.i.l.bf16 %v1230_v10  ;;  %1142 = vmatpush.msrb.mxu3 %v999_v59  ;;  %v941_v8 = vld [vmem:[%s2117_s3 + $0x190] sm:$0xff]  ;;  %v1014_v10 = vld [vmem:[%s2117_s3 + $0x3d8] sm:$0xff] }
 0x128   :  { %1031 = vmatpush.msra.mxu1 %v894_v14  ;;  %1085 = vmatpush.msrb.mxu0 %v948_v24  ;;  %v962_v14 = vld [vmem:[%s2117_s3 + $0x238] sm:$0xff] }
 0x129   :  { %1125 = vmatpush.msrb.mxu2 %v980_v27  ;;  %v869_v34 = vsel %vm34_vm1, %v1450_v13, %v1231_v19  ;;  %v872_v38 = vsel %vm34_vm1, %v1502_v31, %v1232_v17  ;;  %v891_v31 = vld [vmem:[%s2117_s3] sm:$0xff]  ;;  %1143 = vmatpush.msrb.mxu3 %v998_v62  ;;  %v961_v17 = vld [vmem:[%s2117_s3 + $0x230] sm:$0xff]  ;;  %v1006_v59 = vld [vmem:[%s2117_s3 + $0x398] sm:$0xff] }
 0x12a   :  { %1032 = vmatpush.msra.mxu1 %v893_v55  ;;  %1086 = vmatpush.msrb.mxu0 %v947_v16  ;;  %v939_v27 = vld [vmem:[%s2117_s3 + $0x180] sm:$0xff] }
 0x12b   :  { %1126 = vmatpush.msrb.mxu2 %v979_v61  ;;  %1144 = vmatpush.msrb.mxu3 %v997_v1  ;;  %v25_v61 = vld [vmem:[%s2114_s0] sm:$0xff] }
 0x12c   :  { %1033 = vmatpush.msra.mxu1 %v892_v44  ;;  %1087 = vmatpush.msrb.mxu0 %v946_v22  ;;  %v1003_v62 = vld [vmem:[%s2117_s3 + $0x380] sm:$0xff] }
 0x12d   :  { %1127 = vmatpush.msrb.mxu2 %v978_v2  ;;  %1145 = vmatpush.msrb.mxu3 %v996_v53  ;;  %v995_v2 = vld [vmem:[%s2117_s3 + $0x340] sm:$0xff] }
 0x12e   :  { %1034 = vmatpush.msra.mxu1 %v891_v31  ;;  %1088 = vmatpush.msrb.mxu0 %v945_v23 }
 0x12f   :  { %1128 = vmatpush.msrb.mxu2 %v977_v5  ;;  %1203 = vmatmul.msk.f32.vlgmr.msra.gmra.mxu0 %vm34_vm1, %v25_v61  ;;  %v994_v5 = vld [vmem:[%s2117_s3 + $0x338] sm:$0xff] }
 0x130   :  { %1089 = vmatpush.msrb.mxu0 %v944_v28  ;;  %1099 = vmatpush.msrb.mxu1 %v970_v58  ;;  %v1008_v28 = vld [vmem:[%s2117_s3 + $0x3a8] sm:$0xff]  ;;  %v955_v58 = vld [vmem:[%s2117_s3 + $0x200] sm:$0xff] }
 0x131   :  { %1129 = vmatpush.msrb.mxu2 %v976_v45  ;;  %1146 = vmatpush.msrb.mxu3 %v995_v2  ;;  %v993_v45 = vld [vmem:[%s2117_s3 + $0x330] sm:$0xff] }
 0x132   :  { %1090 = vmatpush.msrb.mxu0 %v943_v60  ;;  %1100 = vmatpush.msrb.mxu1 %v969_v52  ;;  %v956_v60 = vld [vmem:[%s2117_s3 + $0x208] sm:$0xff] }
 0x133   :  { %1130 = vmatpush.msrb.mxu2 %v975_v11  ;;  %1147 = vmatpush.msrb.mxu3 %v994_v5  ;;  %v992_v11 = vld [vmem:[%s2117_s3 + $0x328] sm:$0xff] }
 0x134   :  { %1091 = vmatpush.msrb.mxu0 %v942_v29  ;;  %1101 = vmatpush.msrb.mxu1 %v968_v63  ;;  %v1005_v29 = vld [vmem:[%s2117_s3 + $0x390] sm:$0xff]  ;;  %v1004_v52 = vld [vmem:[%s2117_s3 + $0x388] sm:$0xff] }
 0x135   :  { %1131 = vmatpush.msrb.mxu2 %v974_v15  ;;  %1148 = vmatpush.msrb.mxu3 %v993_v45  ;;  %v991_v15 = vld [vmem:[%s2117_s3 + $0x320] sm:$0xff] }
 0x136   :  { %1092 = vmatpush.msrb.mxu0 %v941_v8  ;;  %1102 = vmatpush.msrb.mxu1 %v967_v41 }
 0x137   :  { %1132 = vmatpush.msrb.mxu2 %v973_v12  ;;  %1149 = vmatpush.msrb.mxu3 %v992_v11  ;;  %v1012_v12 = vld [vmem:[%s2117_s3 + $0x3c8] sm:$0xff] }
 0x138   :  { %1093 = vmatpush.msrb.mxu0 %v940_v0  ;;  %1103 = vmatpush.msrb.mxu1 %v966_v50 }
 0x139   :  { %1133 = vmatpush.msrb.mxu2 %v972_v26  ;;  %1150 = vmatpush.msrb.mxu3 %v991_v15  ;;  %v1010_v26 = vld [vmem:[%s2117_s3 + $0x3b8] sm:$0xff] }
 0x13a   :  { %1094 = vmatpush.msrb.mxu0 %v939_v27  ;;  %1104 = vmatpush.msrb.mxu1 %v965_v36 }
 0x13b   :  { %1134 = vmatpush.msrb.mxu2 %v971_v40  ;;  %1151 = vmatpush.msrb.mxu3 %v990_v39 }
 0x13c   :  { %v1240_v57 = vpop.permute.xlu1 %1239  ;;  %1159 = vmatpush.msra.mxu0 %v1018_v35  ;;  %1105 = vmatpush.msrb.mxu1 %v964_v3 }
 0x13d   :  { %v1242_v21 = vunpack.i.h.bf16 %v1240_v57  ;;  %v1241_v56 = vunpack.i.l.bf16 %v1240_v57  ;;  %v1013_v57 = vld [vmem:[%s2117_s3 + $0x3d0] sm:$0xff] }
 0x13e   :  { %v1235_v43 = vpop.permute.xlu0 %1234  ;;  %1160 = vmatpush.msra.mxu0 %v1017_v46  ;;  %1106 = vmatpush.msrb.mxu1 %v963_v7 }
 0x13f   :  { %v1237_v9 = vunpack.i.h.bf16 %v1235_v43  ;;  %v1236_v20 = vunpack.i.l.bf16 %v1235_v43 }
 0x140   :  { %1161 = vmatpush.msra.mxu0 %v1016_v47  ;;  %1107 = vmatpush.msrb.mxu1 %v962_v14 }
 0x141   :  { %v870_v33 = vsel %vm865_vm2, %v869_v34, %v1236_v20  ;;  %v873_v13 = vsel %vm865_vm2, %v872_v38, %v1237_v9  ;;  %v960_v9 = vld [vmem:[%s2117_s3 + $0x228] sm:$0xff]  ;;  %v989_v20 = vld [vmem:[%s2117_s3 + $0x310] sm:$0xff]  ;;  %v959_v34 = vld [vmem:[%s2117_s3 + $0x220] sm:$0xff] }
 0x142   :  { %v871_v48 = vsel %vm867_vm3, %v870_v33, %v1241_v56  ;;  %v874_v51 = vsel %vm867_vm3, %v873_v13, %v1242_v21  ;;  %1162 = vmatpush.msra.mxu0 %v1015_v4  ;;  %1108 = vmatpush.msrb.mxu1 %v961_v17  ;;  %v1011_v56 = vld [vmem:[%s2117_s3 + $0x3c0] sm:$0xff]  ;;  %v988_v38 = vld [vmem:[%s2117_s3 + $0x308] sm:$0xff]  ;;  %v958_v33 = vld [vmem:[%s2117_s3 + $0x218] sm:$0xff] }
 0x143   :  { %1055 = vmatmul.f32.vlgmr.msra.gmra.mxu2 %v871_v48  ;;  %1075 = vmatmul.f32.vlgmr.msra.gmra.mxu3 %v874_v51  ;;  %v987_v13 = vld [vmem:[%s2117_s3 + $0x300] sm:$0xff] }
 0x144   :  { %1163 = vmatpush.msra.mxu0 %v1014_v10  ;;  %1109 = vmatpush.msrb.mxu1 %v960_v9 }
 0x145   :  { %1152 = vmatpush.msrb.mxu3 %v989_v20 }
 0x146   :  { %v1245_v19 = vpop.permute.xlu2 %1244  ;;  %1164 = vmatpush.msra.mxu0 %v1013_v57  ;;  %1110 = vmatpush.msrb.mxu1 %v959_v34 }
 0x147   :  { %v1247_v43 = vunpack.i.h.bf16 %v1245_v19  ;;  %v1246_v55 = vunpack.i.l.bf16 %v1245_v19  ;;  %1153 = vmatpush.msrb.mxu3 %v988_v38 }
 0x148   :  { %1165 = vmatpush.msra.mxu0 %v1012_v12  ;;  %1111 = vmatpush.msrb.mxu1 %v958_v33 }
 0x149   :  { %v864_v48 = vsel %vm34_vm1, %v1467_v30, %v1246_v55  ;;  %v881_v51 = vsel %vm34_vm1, %v1583_v18, %v1247_v43  ;;  %1154 = vmatpush.msrb.mxu3 %v987_v13  ;;  %v1009_v30 = vld [vmem:[%s2117_s3 + $0x3b0] sm:$0xff] }
 0x14a   :  { %1166 = vmatpush.msra.mxu0 %v1011_v56  ;;  %v957_v18 = vld [vmem:[%s2117_s3 + $0x210] sm:$0xff] }
 0x14b   :  { %1112 = vmatpush.msrb.mxu1 %v957_v18 }
 0x14c   :  { %1167 = vmatpush.msra.mxu0 %v1010_v26 }
 0x14d   :  { %1113 = vmatpush.msrb.mxu1 %v956_v60 }
 0x14e   :  { %1168 = vmatpush.msra.mxu0 %v1009_v30 }
 0x14f   :  { %1114 = vmatpush.msrb.mxu1 %v955_v58 }
 0x150   :  { %1169 = vmatpush.msra.mxu0 %v1008_v28 }
 0x152   :  { %1170 = vmatpush.msra.mxu0 %v1007_v54 }
 0x154   :  { %1171 = vmatpush.msra.mxu0 %v1006_v59 }
 0x156   :  { %1172 = vmatpush.msra.mxu0 %v1005_v29 }
 0x158   :  { %1173 = vmatpush.msra.mxu0 %v1004_v52 }
 0x15a   :  { %1174 = vmatpush.msra.mxu0 %v1003_v62 }
 0x15c   :  { %v1255_v24 = vpop.permute.xlu1 %1254 }
 0x15d   :  { %v1257_v31 = vunpack.i.h.bf16 %v1255_v24  ;;  %v1256_v22 = vunpack.i.l.bf16 %v1255_v24 }
 0x15e   :  { %v1250_v21 = vpop.permute.xlu0 %1249 }
 0x15f   :  { %v1252_v44 = vunpack.i.h.bf16 %v1250_v21  ;;  %v1251_v16 = vunpack.i.l.bf16 %v1250_v21 }
 0x161   :  { %v866_v40 = vsel %vm865_vm2, %v864_v48, %v1251_v16  ;;  %v882_v23 = vsel %vm865_vm2, %v881_v51, %v1252_v44 }
 0x162   :  { %v868_v32 = vsel %vm867_vm3, %v866_v40, %v1256_v22  ;;  %v883_v49 = vsel %vm867_vm3, %v882_v23, %v1257_v31 }
 0x163   :  { %1035 = vmatmul.f32.vlgmr.msra.gmra.mxu1 %v868_v32  ;;  %1135 = vmatmul.f32.vlgmr.msrb.gmra.mxu2 %v883_v49 }
 0x166   :  { %v1260_v63 = vpop.permute.xlu2 %1259 }
 0x167   :  { %v1262_v8 = vunpack.i.h.bf16 %v1260_v63  ;;  %v1261_v1 = vunpack.i.l.bf16 %v1260_v63 }
 0x169   :  { %v875_v2 = vsel %vm34_vm1, %v1510_v42, %v1261_v1  ;;  %v884_v46 = vsel %vm34_vm1, %v1683_v37, %v1262_v8 }
 0x16e   :  { %v1275_v41 = vpop.permute.xlu2 %1274 }
 0x16f   :  { %v1276_v3 = vunpack.i.l.bf16 %v1275_v41  ;;  %v1277_v10 = vunpack.i.h.bf16 %v1275_v41 }
 0x171   :  { %v878_v7 = vsel %vm34_vm1, %v1597_v25, %v1276_v3  ;;  %v887_v15 = vsel %vm34_vm1, %v1695_v6, %v1277_v10  ;;  %v1278_v25 = vld [vmem:[%s2118_s4] ss:$0 sm:$0xff]  ;;  %s1310_s4 = smov [#allocation3]  }
 0x172   :  { %s1192_s27 = sshll.u32 %s1310_s4, 4  ;;  %s1193_s27 = int_to_ptr.vmem [resolvable:$true] %s1192_s27 }
 0x176   :  { %v857_v14 = vpop.permute.xlu2 %856 }
 0x177   :  { %v888_v17 = vsel %vm865_vm2, %v887_v15, %v857_v14 }
 0x17c   :  { %v1270_v0 = vpop.permute.xlu1 %1269 }
 0x17d   :  { %v1272_v35 = vunpack.i.h.bf16 %v1270_v0  ;;  %v1271_v50 = vunpack.i.l.bf16 %v1270_v0 }
 0x17e   :  { %v1265_v27 = vpop.permute.xlu0 %1264 }
 0x17f   :  { %v1267_v53 = vunpack.i.h.bf16 %v1265_v27  ;;  %v1266_v61 = vunpack.i.l.bf16 %v1265_v27 }
 0x181   :  { %v876_v36 = vsel %vm865_vm2, %v875_v2, %v1266_v61  ;;  %v885_v5 = vsel %vm865_vm2, %v884_v46, %v1267_v53 }
 0x182   :  { %v877_v47 = vsel %vm867_vm3, %v876_v36, %v1271_v50  ;;  %v886_v45 = vsel %vm867_vm3, %v885_v5, %v1272_v35 }
 0x183   :  { %1095 = vmatmul.f32.vlgmr.msrb.gmra.mxu0 %v877_v47  ;;  %1155 = vmatmul.f32.vlgmr.msrb.gmra.mxu3 %v886_v45 }
 0x184   :  { %v825_v11 = vpop.permute.xlu1 %824 }
 0x186   :  { %v821_v4 = vpop.permute.xlu0 %820 }
 0x187   :  { %v879_v42 = vsel %vm865_vm2, %v878_v7, %v821_v4 }
 0x188   :  { %v880_v37 = vsel %vm867_vm3, %v879_v42, %v825_v11 }
 0x189   :  { %1115 = vmatmul.f32.vlgmr.msrb.gmra.mxu1 %v880_v37 }
 0x18e   :  { %v861_v19 = vpop.permute.xlu0 %860 }
 0x18f   :  { %v889_v57 = vsel %vm867_vm3, %v888_v17, %v861_v19 }
 0x190   :  { %1175 = vmatmul.f32.vlgmr.msra.gmra.mxu0 %v889_v57 }
 0x1ac   :  { %v55_v39 = vpop.f32.mrf.mxu0 }
 0x1ad   :  { %v56_v43 = vadd.f32 %v1278_v25, %v55_v39 }
 0x1af   :  { %59 = vst.msk [vmem:[#allocation2] sm:$0xff] %vm58_vm4, %v56_v43 }
 0x1b6   :  { %v890_v31 = vld [vmem:[#allocation2] sm:$0xff] }
 0x1c6   :  { %v1056_v12 = vpop.f32.mrf.mxu2  ;;  %v1076_v20 = vpop.f32.mrf.mxu3 }
 0x1e0   :  { %v1036_v55 = vpop.f32.mrf.mxu1 }
 0x1e1   :  { %v1057_v9 = vadd.f32 %v1056_v12, %v1036_v55 }
 0x1e3   :  { %v1077_v24 = vadd.f32 %v1076_v20, %v1057_v9 }
 0x1e6   :  { %v1136_v38 = vpop.f32.mrf.mxu2 }
 0x200   :  { %v1096_v6 = vpop.f32.mrf.mxu0 }
 0x201   :  { %v1097_v21 = vadd.f32 %v1096_v6, %v1077_v24 }
 0x206   :  { %v1116_v56 = vpop.f32.mrf.mxu1  ;;  %v1156_v16 = vpop.f32.mrf.mxu3 }
 0x207   :  { %v1117_v34 = vadd.f32 %v1116_v56, %v1097_v21 }
 0x209   :  { %v1137_v44 = vadd.f32 %v1136_v38, %v1117_v34 }
 0x20b   :  { %v1157_v26 = vadd.f32 %v1156_v16, %v1137_v44 }
 0x20d   :  { %v1176_v33 = vpop.f32.mrf.mxu0 }
 0x20e   :  { %v1177_v13 = vadd.f32 %v1176_v33, %v1157_v26 }
 0x210   :  { %v1179_v22 = vadd.f32 %v1177_v13, %v890_v31 }
 0x212   :  { %1181 = vst.msk [vmem:[#allocation2] sm:$0xff] %vm58_vm4, %v1179_v22 }
 0x219   :  { %v1185_v48 = vld [vmem:[#allocation2] sm:$0xff] }
 0x21a   :  { %1186 = vst.msk [vmem:[#allocation3] sm:$0xff] %vm58_vm4, %v1185_v48 }
 0x21b   :  { %1197 = dma.vmem_to_hbm [thread:$0]  %s1193_s27, 128, %s1195_s29, [#allocation4]  }
 0x21c   :  { %1303 = dma.done.wait [#allocation4], 128  }
 0x21d   :  { %1304 = vsyncadd [#allocation4], 4294967168 }
 0x21e   :  { %1202 = vsyncpa [#allocation4], 1 }

</bundles_post_ra>
